<compile_context>
chip_gen: v7x
topology: tpu7x:2x2x1
jax: 0.10.0
libtpu: 0.0.40
codegen_flags: <defaults>
</compile_context>

<pallas_src>
import jax
import jax.numpy as jnp
from jax.experimental import pallas as pl
from jax.experimental.pallas import tpu as pltpu


# ----------------------------- Pallas kernel ------------------------------- #

def _r1_sumsq_kernel(g_ref, o_ref, acc_ref):
    """Per-core partial sum(grad^2).

    grid = (ncores, ksteps); axis 0 is 'parallel' (megacore split on v7x),
    axis 1 is the 'arbitrary' reduction axis. acc_ref is a per-core VMEM
    accumulator the same shape as the input block; only the final step does
    the cross-lane reduce and writes the (1, 1) partial.
    """
    k = pl.program_id(1)

    @pl.when(k == 0)
    def _init():
        acc_ref[...] = jnp.zeros_like(acc_ref)

    g = g_ref[...].astype(jnp.float32)
    acc_ref[...] += g * g                      # pure VPU elementwise per step

    @pl.when(k == pl.num_programs(1) - 1)
    def _finalize():
        o_ref[...] = jnp.sum(acc_ref[...]) * jnp.ones((1, 1), jnp.float32)


def r1_penalty_pallas(grad_flat: jax.Array, batch_size: int,
                      *, lane: int = 512, target_block_bytes: int = 2 << 20):
    """grad_flat: (B, D) gradient (any float dtype); returns scalar r1 penalty.

    r1 = mean_b( sum_i grad[b, i]^2 ) == sum(grad^2) / batch_size
    """
    x = jnp.ravel(grad_flat)
    n = x.shape[0]
    itemsize = jnp.dtype(x.dtype).itemsize

    # Rows of a lane-dense slab, rounded up to the sublane multiple (8).
    rows = -(-n // lane)
    rows8 = -(-rows // 8) * 8

    # Block rows (multiple of 8) targeting ~target_block_bytes per input block.
    bytes_per_row = lane * itemsize
    block_rows = max(8, (target_block_bytes // bytes_per_row) // 8 * 8)

    if rows8 <= block_rows:
        # Small input: single block, single step, single core (toy case lands here).
        block_rows = rows8
        ncores = 1
        total_rows = rows8
    else:
        # Large input: split row-blocks across 2 TensorCores (v7x megacore).
        ncores = 2
        per_core_steps = -(-rows8 // (ncores * block_rows))
        total_rows = ncores * per_core_steps * block_rows

    ksteps = total_rows // (ncores * block_rows)

    pad = total_rows * lane - n
    if pad:
        x = jnp.pad(x, (0, pad))               # zeros do not change sum(grad^2)
    g2d = x.reshape(total_rows, lane)

    def in_map(c, k):
        return (c * ksteps + k, 0)

    partials = pl.pallas_call(
        _r1_sumsq_kernel,
        out_shape=jax.ShapeDtypeStruct((ncores, 1), jnp.float32),
        grid_spec=pltpu.PrefetchScalarGridSpec(
            num_scalar_prefetch=0,
            grid=(ncores, ksteps),
            in_specs=[pl.BlockSpec((block_rows, lane), in_map)],
            out_specs=pl.BlockSpec((1, 1), lambda c, k: (c, 0)),
            scratch_shapes=[pltpu.VMEM((block_rows, lane), jnp.float32)],
        ),
        compiler_params=pltpu.CompilerParams(
            dimension_semantics=("parallel", "arbitrary")),
    )(g2d)

    return jnp.sum(partials) / batch_size


# ------------------------- glue: discriminator + grad ---------------------- #
# The discriminator is an *external argument* of R1Regularization in PyTorch,
# so it stays in plain JAX here (deterministic synthetic weights).
# TODO(synk): SimCLRAugmentation / contrastive-discriminator branch and
#             GradScaler rescaling path are not modeled (scaler=None path).

def make_discriminator_params(key, in_features, hidden):
    k1, k2, k3, k4 = jax.random.split(key, 4)
    return {
        "w1": jax.random.normal(k1, (in_features, hidden), jnp.float32) * 0.02,
        "b1": jax.random.normal(k2, (hidden,), jnp.float32) * 0.01,
        "w2": jax.random.normal(k3, (hidden, 1), jnp.float32) * 0.02,
        "b2": jax.random.normal(k4, (1,), jnp.float32) * 0.01,
    }


def discriminator(x, params):
    # x: (B, C, H, W) NCHW, flattened for a small MLP discriminator.
    B = x.shape[0]
    xf = x.reshape(B, -1)
    h = jax.nn.leaky_relu(xf @ params["w1"] + params["b1"], 0.2)
    out = (h @ params["w2"] + params["b2"])[:, 0]   # (B,) logits
    return out, h                                    # (reals_out, feature)


def r1_regularization(reals, params, batch_size):
    """Forward pass of R1Regularization (reals_out recomputed path)."""
    reals = reals[:batch_size]

    def loss_fn(x):
        out, _ = discriminator(x, params)
        return out.sum()

    grad = jax.grad(loss_fn)(reals)                     # (B, C, H, W)
    grad_flat = grad.reshape(grad.shape[0], -1)         # flatten(start_dim=1)
    return r1_penalty_pallas(grad_flat, grad_flat.shape[0])


# ----------------------------------- main ----------------------------------- #

if __name__ == "__main__":
    key = jax.random.PRNGKey(0)
    k_x, k_p = jax.random.split(key)

    batch_size, C, H, W = 2, 4, 16, 16
    hidden = 32

    reals = jax.random.normal(k_x, (batch_size, C, H, W), jnp.float32)
    params = make_discriminator_params(k_p, C * H * W, hidden)

    r1 = r1_regularization(reals, params, batch_size)
    r1 = jax.block_until_ready(r1)

    # Reference (plain JAX) check of the Pallas reduction.
    def loss_fn(x):
        out, _ = discriminator(x, params)
        return out.sum()
    grad_ref = jax.grad(loss_fn)(reals[:batch_size]).reshape(batch_size, -1)
    r1_ref = jnp.mean(jnp.sum(grad_ref ** 2, axis=1))

    assert jnp.allclose(r1, r1_ref, rtol=1e-5, atol=1e-6), (r1, r1_ref)
    print("KERNEL_OK")
</pallas_src>

<mosaic_0001>
module attributes {stable_mosaic.version = 11 : i64} {
  func.func @_r1_sumsq_kernel(%arg0: i32, %arg1: i32, %arg2: memref<8x512xf32, #tpu.memory_space<vmem>>, %arg3: memref<1x1xf32, #tpu.memory_space<vmem>>, %arg4: memref<8x512xf32, #tpu.memory_space<vmem>>) attributes {dimension_semantics = [#tpu.dimension_semantics<parallel>, #tpu.dimension_semantics<arbitrary>], iteration_bounds = array<i64: 1, 1>, scalar_prefetch = 0 : i64, scratch_operands = 1 : i64, tpu.core_type = #tpu.core_type<tc>, window_params = [{transform_indices = @transform_0, window_bounds = array<i64: 8, 512>}, {transform_indices = @transform_1, window_bounds = array<i64: 1, 1>}]} {
    %c0_i32 = arith.constant 0 : i32
    %0 = arith.cmpi eq, %arg1, %c0_i32 : i32
    %1 = arith.extui %0 : i1 to i32
    %c0_i32_0 = arith.constant 0 : i32
    %2 = arith.cmpi ne, %1, %c0_i32_0 : i32
    scf.if %2 {
      %cst = arith.constant 0.000000e+00 : f32
      %11 = vector.broadcast %cst : f32 to vector<8x512xf32>
      %c0_8 = arith.constant 0 : index
      %c0_9 = arith.constant 0 : index
      %12 = vector.load %arg4[%c0_8, %c0_9] : memref<8x512xf32, #tpu.memory_space<vmem>>, vector<8x512xf32>
      tpu.vector_store %arg4[%c0_8, %c0_9], %11 {strides = array<i32>} : memref<8x512xf32, #tpu.memory_space<vmem>>, vector<8x512xf32>,
    } else {
    }
    %c0 = arith.constant 0 : index
    %c0_1 = arith.constant 0 : index
    %3 = vector.load %arg2[%c0, %c0_1] : memref<8x512xf32, #tpu.memory_space<vmem>>, vector<8x512xf32>
    %c0_2 = arith.constant 0 : index
    %c0_3 = arith.constant 0 : index
    %4 = vector.load %arg4[%c0_2, %c0_3] : memref<8x512xf32, #tpu.memory_space<vmem>>, vector<8x512xf32>
    %5 = arith.mulf %3, %3 : vector<8x512xf32>
    %6 = arith.addf %4, %5 : vector<8x512xf32>
    %c0_4 = arith.constant 0 : index
    %c0_5 = arith.constant 0 : index
    %7 = vector.load %arg4[%c0_4, %c0_5] : memref<8x512xf32, #tpu.memory_space<vmem>>, vector<8x512xf32>
    tpu.vector_store %arg4[%c0_4, %c0_5], %6 {strides = array<i32>} : memref<8x512xf32, #tpu.memory_space<vmem>>, vector<8x512xf32>,
    %c0_i32_6 = arith.constant 0 : i32
    %8 = arith.cmpi eq, %arg1, %c0_i32_6 : i32
    %9 = arith.extui %8 : i1 to i32
    %c0_i32_7 = arith.constant 0 : i32
    %10 = arith.cmpi ne, %9, %c0_i32_7 : i32
    scf.if %10 {
      %c0_8 = arith.constant 0 : index
      %c0_9 = arith.constant 0 : index
      %11 = vector.load %arg4[%c0_8, %c0_9] : memref<8x512xf32, #tpu.memory_space<vmem>>, vector<8x512xf32>
      %12 = vector.shape_cast %11 : vector<8x512xf32> to vector<1x8x512xf32>
      %cst = arith.constant dense<0.000000e+00> : vector<1xf32>
      %13 = vector.multi_reduction <add>, %12, %cst [1, 2] : vector<1x8x512xf32> to vector<1xf32>
      %14 = vector.shape_cast %13 : vector<1xf32> to vector<1x1x1xf32>
      %15 = vector.extract %14[0, 0, 0] : f32 from vector<1x1x1xf32>
      %cst_10 = arith.constant 1.000000e+00 : f32
      %16 = vector.broadcast %cst_10 : f32 to vector<1x1xf32>
      %17 = vector.broadcast %15 : f32 to vector<1x1xf32>
      %18 = arith.mulf %17, %16 : vector<1x1xf32>
      %c0_11 = arith.constant 0 : index
      %c0_12 = arith.constant 0 : index
      %19 = vector.load %arg3[%c0_11, %c0_12] : memref<1x1xf32, #tpu.memory_space<vmem>>, vector<1x1xf32>
      tpu.vector_store %arg3[%c0_11, %c0_12], %18 {strides = array<i32>} : memref<1x1xf32, #tpu.memory_space<vmem>>, vector<1x1xf32>,
    } else {
    }
    return
  }
  func.func @transform_0(%arg0: i32, %arg1: i32) -> (i32, i32) {
    %c1_i32 = arith.constant 1 : i32
    %0 = arith.muli %arg0, %c1_i32 : i32
    %1 = arith.addi %0, %arg1 : i32
    %c0_i32 = arith.constant 0 : i32
    %c0_i32_0 = arith.constant 0 : i32
    return %1, %c0_i32 : i32, i32
  }
  func.func @transform_1(%arg0: i32, %arg1: i32) -> (i32, i32) {
    %c0_i32 = arith.constant 0 : i32
    %c0_i32_0 = arith.constant 0 : i32
    return %arg0, %c0_i32 : i32, i32
  }
}

</mosaic_0001>

<bundles_post_ra>
// kernel: tpu_custom_call.1
= control target key start
LH: loop header
LB: loop body
LE: loop exit
PB: predicated region body
PF: predicated region fallthrough
CT: control target
= control target key end

     0   :  { %6 = vsyncpa [#allocation4], 0  ;;  %s179_s0 = inlined_call_operand.hbm [shape: f32[8,512], index: 0, kind: input, shape index: {}]   ;;  %s180_s1 = inlined_call_operand.hbm [shape: f32[1,1], index: 1, kind: output, shape index: {}]  }
   0x1   :  { %7 = vsyncpa [#allocation5], 0  ;;  %s143_s6 = smov [#allocation3]   ;;  %s95_s10 = scalar_lea.hbm %s179_s0, 512 }
   0x2   :  { %s18_s7 = sshll.u32 %s143_s6, 4  ;;  %p96_p0 = scmp.ne.s32.totalorder %s179_s0, %s95_s10  ;;  %s19_s7 = int_to_ptr.vmem [resolvable:$true] %s18_s7 }
   0x3   :  { %p99_p1 = scmp.lt.u32.totalorder %s95_s10, %s179_s0 }
   0x5   :  { %p101_p2 = pnand %p99_p1, %p96_p0 }
   0x7   :  { %104 = shalt.err (!%p101_p2)
}
   0x8   :  { %s105_s15 = scalar_lea.vmem %s19_s7, 512  ;;  %p110_p4 = scmp.lt.s32.totalorder %s19_s7, %s19_s7 }
   0x9   :  { %p106_p3 = scmp.ne.s32.totalorder %s19_s7, %s105_s15  ;;  %p111_p5 = scmp.lt.s32.totalorder %s105_s15, %s105_s15 }
   0xb   :  { %p112_p6 = por %p111_p5, %p110_p4 }
   0xd   :  { %p113_p7 = pnand %p112_p6, %p106_p3 }
   0xf   :  { %116 = shalt.err (!%p113_p7)
}
  0x10   :  { %21 = dma.hbm_to_vmem [thread:$0]  %s179_s0, 512, %s19_s7, [#allocation4]  }
  0x11   :  { %139 = dma.done.wait [#allocation4], 512  }
  0x12   :  { %140 = vsyncadd [#allocation4], 4294966784  ;;  %v34_v0 = vld [vmem:[#allocation3] sm:$0xff]  ;;  %v35_v1 = vld [vmem:[#allocation3 + $0x8] sm:$0xff]  ;;  %s144_s0 = smov [#allocation6]   ;;  %vm74_vm0 = vcmask 0  }
  0x13   :  { %v36_v2 = vld [vmem:[#allocation3 + $0x10] sm:$0xff]  ;;  %v37_v3 = vld [vmem:[#allocation3 + $0x18] sm:$0xff]  ;;  %v42_v4 = vmul.f32 %v34_v0, %v34_v0  ;;  %v43_v5 = vmul.f32 %v35_v1, %v35_v1  ;;  %s82_s18 = sshll.u32 %s144_s0, 4  ;;  %s83_s18 = int_to_ptr.vmem [resolvable:$true] %s82_s18 }
  0x14   :  { %v44_v6 = vmul.f32 %v36_v2, %v36_v2  ;;  %v45_v7 = vmul.f32 %v37_v3, %v37_v3  ;;  %s117_s20 = scalar_lea.vmem %s83_s18, 16  ;;  %s121_s21 = scalar_lea.vmem %s83_s18, 32 }
  0x15   :  { %v61_v8 = vadd.f32 %v43_v5, %v42_v4  ;;  %p118_p8 = scmp.ne.s32.totalorder %s83_s18, %s117_s20  ;;  %p122_p9 = scmp.lt.s32.totalorder %s83_s18, %s83_s18 }
  0x16   :  { %p123_p10 = scmp.lt.s32.totalorder %s121_s21, %s117_s20 }
  0x17   :  { %v62_v9 = vadd.f32 %v61_v8, %v44_v6 }
  0x18   :  { %p124_p11 = por %p123_p10, %p122_p9 }
  0x19   :  { %v63_v10 = vadd.f32 %v62_v9, %v45_v7 }
  0x1a   :  { %p125_p12 = pnand %p124_p11, %p118_p8 }
  0x1b   :  { %64 = vadd.xlane.f32.xlu0 %v63_v10 }
  0xa8   :  { %v65_v11 = vpop.xlane.xlu0 %64 }
  0xa9   :  { %v66_v12 = vrot.slane %v65_v11, 4 }
  0xab   :  { %v67_v13 = vadd.f32 %v66_v12, %v65_v11 }
  0xad   :  { %v68_v14 = vrot.slane %v67_v13, 2 }
  0xaf   :  { %v69_v15 = vadd.f32 %v68_v14, %v67_v13 }
  0xb1   :  { %v70_v16 = vrot.slane %v69_v15, 1 }
  0xb3   :  { %v71_v17 = vadd.f32 %v70_v16, %v69_v15 }
  0xb5   :  { %91 = vpush %v71_v17 }
  0xe6   :  { %s92_s19 = spop %91 }
  0xe7   :  { %v73_v18 = vstv %s92_s19 }
  0xe8   :  { %75 = vst.msk [vmem:[#allocation6] sm:$0x1] %vm74_vm0, %v73_v18 }
  0xe9   :  { %128 = shalt.err (!%p125_p12)
}
  0xea   :  { %s129_s24 = scalar_lea.hbm %s180_s1, 16 }
  0xeb   :  { %p130_p13 = scmp.ne.s32.totalorder %s180_s1, %s129_s24  ;;  %p133_p0 = scmp.lt.u32.totalorder %s129_s24, %s180_s1 }
  0xed   :  { %p135_p1 = pnand %p133_p0, %p130_p13 }
  0xef   :  { %138 = shalt.err (!%p135_p1)
}
  0xf0   :  { %85 = dma.vmem_to_hbm [thread:$0]  %s83_s18, 16, %s180_s1, [#allocation5]  }
  0xf1   :  { %141 = dma.done.wait [#allocation5], 16  }
  0xf2   :  { %142 = vsyncadd [#allocation5], 4294967280 }
  0xf3   :  { %89 = vsyncpa [#allocation4], 1 }
  0xf4   :  { %90 = vsyncpa [#allocation5], 1 }

</bundles_post_ra>
